<compile_context>
chip_gen: v7x
topology: tpu7x:2x2x1
jax: 0.10.0
libtpu: 0.0.40
codegen_flags: <defaults>
</compile_context>

<pallas_src>
import functools
import math

import jax
import jax.numpy as jnp
from jax.experimental import pallas as pl
from jax.experimental.pallas import tpu as pltpu


# --------------------------------------------------------------------------- #
# Positional-encoding table (identical to the PyTorch sin/cos init).
# --------------------------------------------------------------------------- #
def make_positional_encoding(hidden_dim: int, max_length: int = 1000) -> jnp.ndarray:
    position = jnp.arange(0, max_length, dtype=jnp.float32)[:, None]           # (L, 1)
    div_term = jnp.exp(
        jnp.arange(0, hidden_dim, 2, dtype=jnp.float32)
        * (-math.log(10000.0) / hidden_dim)
    )                                                                           # (H/2,)
    pe = jnp.zeros((max_length, hidden_dim), dtype=jnp.float32)
    pe = pe.at[:, 0::2].set(jnp.sin(position * div_term))
    pe = pe.at[:, 1::2].set(jnp.cos(position * div_term))
    return pe                                                                   # (L, H)


def prepare_pe(pe: jnp.ndarray, seq_len: int, dtype) -> jnp.ndarray:
    """Hoisted once at module init: slice to seq_len and cast to the activation
    dtype so no per-call slice/convert pass over pe is needed."""
    if pe.shape[0] < seq_len:
        raise ValueError(
            f"positional-encoding table has {pe.shape[0]} rows, need >= {seq_len}")
    return pe[:seq_len].astype(dtype)


# --------------------------------------------------------------------------- #
# Tiling helpers.
# --------------------------------------------------------------------------- #
@functools.lru_cache(maxsize=1)
def _vmem_budget():
    """(target_block_bytes, vmem_limit_bytes), sized per TPU generation."""
    try:
        info = pltpu.get_tpu_info()
        vmem = int(getattr(info, "vmem_capacity_bytes", 0) or 0)
    except Exception:
        vmem = 0
    if vmem >= (100 << 20):            # v5e / v6e: 128 MiB physical VMEM
        return 8 << 20, 80 << 20
    return 4 << 20, 48 << 20           # conservative / v7x-safe (64 MiB physical)


def _round_down(x: int, m: int) -> int:
    return (x // m) * m


def _choose_fold(batch: int, seq: int, sub: int) -> int:
    """Outer factor Sq of S folded into the row axis so rows = B*Sq is
    sublane-aligned.  Returns 1 (no fold) when B is already aligned or no
    suitable divisor of S exists."""
    if batch % sub == 0:
        return 1
    for sq in range(sub, seq + 1, sub):      # smallest multiple of `sub` dividing S
        if seq % sq == 0:
            return sq
    return 1


# --------------------------------------------------------------------------- #
# Kernel: one vld + vadd + vst per vreg.
#   x_ref / o_ref : (bt, tc) lane-dense tiles
#   pe_ref        : (bt, tc) (fold path, plain add) or (1, tc) (sublane bcast)
# --------------------------------------------------------------------------- #
def _pos_enc_kernel(x_ref, pe_ref, o_ref):
    o_ref[...] = x_ref[...] + pe_ref[...]


@jax.jit
def positional_encoding(x: jnp.ndarray, pe: jnp.ndarray) -> jnp.ndarray:
    """x: (B, S, H); pe: (L, H) with L >= S (ideally pre-sliced / pre-cast via
    prepare_pe).  Returns x + pe[:S] broadcast over the batch dimension."""
    B, S, H = x.shape
    if pe.ndim != 2 or pe.shape[1] != H:
        raise ValueError(f"pe must be (L, {H}), got {pe.shape}")
    if pe.shape[0] < S:
        raise ValueError(
            f"positional-encoding table has {pe.shape[0]} rows < sequence length {S}")
    pe_s = pe if (pe.shape[0] == S and pe.dtype == x.dtype) else pe[:S].astype(x.dtype)

    itemsize = jnp.dtype(x.dtype).itemsize
    sub = max(8, 32 // itemsize)                 # sublane pack: 8 f32 / 16 bf16 / 32 i8
    target_block_bytes, vmem_limit = _vmem_budget()

    # ----- layout: fold part of S into the row axis when B is sublane-ragged ----
    sq = _choose_fold(B, S, sub)
    if sq > 1:
        rows, cols = B * sq, (S // sq) * H
        x2 = x.reshape(rows, cols)               # row (b, q) <-> batch b, seq group q
        pe2 = pe_s.reshape(sq, cols)             # one pe row-group, shared by all b
        bt = sq                                  # row block == one batch's pe rows
    else:
        rows, cols = B, S * H                    # lane-dense flatten
        x2 = x.reshape(rows, cols)
        pe2 = pe_s.reshape(1, cols)              # sublane-broadcast inside the kernel
        bt = None                                # chosen below

    # ----- lane (column) tile: multiple of 128, ragged last block masked --------
    row_unit = bt if bt is not None else max(1, min(rows, sub))
    if cols <= 128:
        tc = cols                                # full-extent block is always legal
    else:
        max_lane = max(128, target_block_bytes // (row_unit * itemsize))
        tc = _round_down(min(cols, max_lane), 128)

    # ----- row tile (no-fold path): grow toward the byte target -----------------
    if bt is None:
        if rows <= sub:
            bt = rows                            # full extent (legal even if < 8)
        else:
            want = max(sub, target_block_bytes // (tc * itemsize))
            bt = max(sub, min(_round_down(want, sub), _round_down(rows, sub)))

    n_col = pl.cdiv(cols, tc)
    n_row = pl.cdiv(rows, bt)
    pe_block_rows = pe2.shape[0]                 # sq (fold) or 1 (broadcast)

    out2 = pl.pallas_call(
        _pos_enc_kernel,
        out_shape=jax.ShapeDtypeStruct((rows, cols), x.dtype),
        # Column tiles outermost: v7x's two TensorCores split the wide axis,
        # and pe's block index depends only on j so it stays resident across
        # the inner row (batch) loop.
        grid=(n_col, n_row),
        in_specs=[
            pl.BlockSpec((bt, tc), lambda j, i: (i, j)),             # x tile
            pl.BlockSpec((pe_block_rows, tc), lambda j, i: (0, j)),  # pe tile
        ],
        out_specs=pl.BlockSpec((bt, tc), lambda j, i: (i, j)),
        input_output_aliases={0: 0},             # reuse x's buffer when donated
        compiler_params=pltpu.CompilerParams(
            dimension_semantics=("parallel", "parallel"),
            vmem_limit_bytes=vmem_limit,
        ),
    )(x2, pe2)

    return out2.reshape(B, S, H)


# --------------------------------------------------------------------------- #
# Demo / correctness checks.
# --------------------------------------------------------------------------- #
if __name__ == "__main__":
    max_length = 1000
    key = jax.random.PRNGKey(0)
    k1, k2, k3 = jax.random.split(key, 3)

    # --- f32, small batch: exercises the sublane-fold path -------------------
    B, S, H = 2, 8, 32
    pe_full = make_positional_encoding(H, max_length)
    x = jax.random.normal(k1, (B, S, H), dtype=jnp.float32)
    pe = prepare_pe(pe_full, S, x.dtype)         # slice + cast hoisted to init
    out = jax.block_until_ready(positional_encoding(x, pe))
    ref = x + pe_full[None, :S, :]
    assert out.shape == (B, S, H)
    assert jnp.allclose(out, ref, atol=1e-6, rtol=1e-6), "f32 fold-path mismatch"

    # --- f32, non-128-divisible S*H: exercises cdiv ragged lane tiles --------
    B2, S2, H2 = 3, 10, 24
    pe2_full = make_positional_encoding(H2, max_length)
    x2 = jax.random.normal(k2, (B2, S2, H2), dtype=jnp.float32)
    pe2 = prepare_pe(pe2_full, S2, x2.dtype)
    out2 = jax.block_until_ready(positional_encoding(x2, pe2))
    ref2 = x2 + pe2_full[None, :S2, :]
    assert jnp.allclose(out2, ref2, atol=1e-6, rtol=1e-6), "ragged-tile mismatch"

    # --- bf16 activations: whole add in bf16 (relaxed tolerance vs f32 pe) ---
    B3, S3, H3 = 16, 8, 32
    x3 = jax.random.normal(k3, (B3, S3, H3), dtype=jnp.bfloat16)
    pe3 = prepare_pe(pe_full, S3, x3.dtype)
    out3 = jax.block_until_ready(positional_encoding(x3, pe3))
    ref3 = (x3.astype(jnp.float32) + pe_full[None, :S3, :]).astype(jnp.bfloat16)
    assert jnp.allclose(out3.astype(jnp.float32), ref3.astype(jnp.float32),
                        atol=3e-2, rtol=3e-2), "bf16 path mismatch"

    print("KERNEL_OK")
</pallas_src>

<mosaic_0001>
module attributes {stable_mosaic.version = 11 : i64} {
  func.func @_pos_enc_kernel(%arg0: i32, %arg1: i32, %arg2: memref<8x32xf32, #tpu.memory_space<vmem>>, %arg3: memref<8x32xf32, #tpu.memory_space<vmem>>, %arg4: memref<8x32xf32, #tpu.memory_space<vmem>>) attributes {dimension_semantics = [#tpu.dimension_semantics<parallel>, #tpu.dimension_semantics<parallel>], iteration_bounds = array<i64: 1, 2>, scalar_prefetch = 0 : i64, scratch_operands = 0 : i64, tpu.core_type = #tpu.core_type<tc>, window_params = [{transform_indices = @transform_0, window_bounds = array<i64: 8, 32>}, {transform_indices = @transform_1, window_bounds = array<i64: 8, 32>}, {transform_indices = @transform_2, window_bounds = array<i64: 8, 32>}]} {
    %c0 = arith.constant 0 : index
    %c0_0 = arith.constant 0 : index
    %0 = vector.load %arg2[%c0, %c0_0] : memref<8x32xf32, #tpu.memory_space<vmem>>, vector<8x32xf32>
    %c0_1 = arith.constant 0 : index
    %c0_2 = arith.constant 0 : index
    %1 = vector.load %arg3[%c0_1, %c0_2] : memref<8x32xf32, #tpu.memory_space<vmem>>, vector<8x32xf32>
    %2 = arith.addf %0, %1 : vector<8x32xf32>
    %c0_3 = arith.constant 0 : index
    %c0_4 = arith.constant 0 : index
    %3 = vector.load %arg4[%c0_3, %c0_4] : memref<8x32xf32, #tpu.memory_space<vmem>>, vector<8x32xf32>
    tpu.vector_store %arg4[%c0_3, %c0_4], %2 {strides = array<i32>} : memref<8x32xf32, #tpu.memory_space<vmem>>, vector<8x32xf32>,
    return
  }
  func.func @transform_0(%arg0: i32, %arg1: i32) -> (i32, i32) {
    %c0_i32 = arith.constant 0 : i32
    return %arg1, %arg0 : i32, i32
  }
  func.func @transform_1(%arg0: i32, %arg1: i32) -> (i32, i32) {
    %c0_i32 = arith.constant 0 : i32
    %c0_i32_0 = arith.constant 0 : i32
    return %c0_i32, %arg0 : i32, i32
  }
  func.func @transform_2(%arg0: i32, %arg1: i32) -> (i32, i32) {
    %c0_i32 = arith.constant 0 : i32
    return %arg1, %arg0 : i32, i32
  }
}

</mosaic_0001>

<bundles_post_ra>
// kernel: positional_encoding.1
= control target key start
LH: loop header
LB: loop body
LE: loop exit
PB: predicated region body
PF: predicated region fallthrough
CT: control target
= control target key end

     0   :  { %s355_s9 = smov 0   ;;  %s357_s10 = smov 0   ;;  %s374_s0 = inlined_call_operand.vmem [shape: f32[16,32], index: 0, kind: input, shape index: {}, may-alias: {0,2}]   ;;  %s375_s1 = inlined_call_operand.vmem [shape: f32[8,32], index: 1, kind: input, shape index: {}]   ;;  %s376_s2 = inlined_call_operand.vmem [shape: f32[16,32], index: 2, kind: output, shape index: {}, may-alias: {0,2}]  }
   0x1   :  { %s336_s11 = smov 0  }
   0x2 LB: > { %s21_s12 = sadd.s32 1, %s334_s10  ;;  %p287_p0 = scmp.ge.s32.totalorder %s338_s11, 1  ;;  %s338_s11 = sphi %s336_s11, %s12_s11   ;;  %s334_s10 = sphi %s357_s10, %s378_s10   ;;  %s330_s9 = sphi %s355_s9, %s377_s9  }
   0x3   : > { %p22_p1 = scmp.ge.s32.totalorder %s21_s12, 2  ;;  %p139_p2 = scmp.lt.s32.totalorder %s338_s11, 3 }
   0x5   : > { %s380_s12 = smov (%p22_p1, %s21_s12), 0  ;;  %p140_p3 = pnand %p287_p0, %p139_p2 }
   0x6   : > { %p169_p4 = scmp.lt.s32.totalorder (!%p140_p3), %s330_s9, 1  ;;  %v188_v0 = vld [vmem:[%s375_s1] sm:$0xff] (!%p140_p3)  ;;  %vm190_vm0 = vcmask (!%p140_p3), 261120  }
   0x7   : > { %143 = sbr.rel (%p140_p3) target bundleno = 21 (0x15), region = 28 }
   0xe   : > { %s382_s9 = smov (!%p169_p4, %s330_s9), 1 }
   0xf   : > { %s288_s13 = sshll.u32 %s382_s9, 3 }
  0x10   : > { %s175_s18 = scalar_lea.vmem %s374_s0, %s288_s13  ;;  %s186_s21 = scalar_lea.vmem %s376_s2, %s288_s13 }
  0x11   : > { %v187_v1 = vld [vmem:[%s175_s18] sm:$0xff] }
  0x12   : > { %v189_v2 = vadd.f32 %v188_v0, %v187_v1 }
  0x14   : > { %191 = vst.msk [vmem:[%s186_s21] sm:$0xff] %vm190_vm0, %v189_v2 }
  0x15 PF: > { %s12_s11 = sadd.s32 1, %s338_s11   ;;  %s377_s9 = smov %s334_s10 }
  0x16   : > { %p9_p5 = scmp.ge.s32.totalorder %s12_s11, 4   ;;  %s378_s10 = smov %s380_s12 }
  0x18   :  { %11 = sbr.rel (!%p9_p5) target bundleno = 2 (0x2), region = 61 }

</bundles_post_ra>
